<compile_context>
chip_gen: v7x
topology: tpu7x:2x2x1
jax: 0.10.0
libtpu: 0.0.40
codegen_flags: <defaults>
</compile_context>

<pallas_src>
import numpy as np
import jax
import jax.numpy as jnp
from jax.experimental import pallas as pl
from jax.experimental.pallas import tpu as pltpu


# The reference torch module hardcodes exp(-48*(cos-0.1)) / exp(48*(cos+0.1))
# (its self.alpha=32 / self.mrg=0.1 ctor args are NOT used in the exp terms),
# so we match that exactly.
_ALPHA = 48.0
_MRG = 0.1
_POS_TIMES_NEG = float(np.exp(2.0 * _ALPHA * _MRG))   # pos_exp * neg_exp == e^9.6


# --------------------------------------------------------------------------
# Fused Pallas kernel: cos matmul + masked exp column reductions
# --------------------------------------------------------------------------
def _fused_pa_kernel(x_ref, p_ref, t_ref, out_ref):
    # grid = (C_tiles, N_tiles); axis 1 (N) is the reduction axis.
    ci = pl.program_id(0)
    ni = pl.program_id(1)

    x = x_ref[...].astype(jnp.float32)                     # (TN, D)
    p = p_ref[...].astype(jnp.float32)                     # (TC, D)
    labels = t_ref[...]                                    # (TN, 1) int32

    # l2_norm (torch): v / sqrt(sum(v^2) + 1e-12)
    xn = x * jax.lax.rsqrt(jnp.sum(x * x, axis=1, keepdims=True) + 1e-12)
    pn = p * jax.lax.rsqrt(jnp.sum(p * p, axis=1, keepdims=True) + 1e-12)

    # cos tile = F.linear(xn, pn, bias=0.001)  -> (TN, TC) on the MXU.
    cos = jax.lax.dot_general(
        xn, pn, (((1,), (1,)), ((), ())),
        preferred_element_type=jnp.float32) + 0.001

    tn, tc = cos.shape
    # Positive mask built in-kernel from int32 labels (no dense one-hot input).
    class_ids = ci * tc + jax.lax.broadcasted_iota(jnp.int32, (tn, tc), 1)
    pos_mask = (class_ids == labels).astype(jnp.float32)   # (TN, TC)

    # Single transcendental: pos_exp * neg_exp == exp(2*alpha*mrg) is constant,
    # so pos_exp = const / neg_exp (exact reciprocal; exp(+-48x) amplification
    # makes the approx rcp risky for tolerance).
    neg_exp = jnp.exp(_ALPHA * (cos + _MRG))
    pos_exp = _POS_TIMES_NEG * pl.reciprocal(neg_exp, approx=False)

    # Multiplicative masking (no float-equality compare/select).
    p_sim = jnp.sum(pos_mask * pos_exp, axis=0, keepdims=True)            # (1,TC)
    n_sim = jnp.sum((1.0 - pos_mask) * neg_exp, axis=0, keepdims=True)    # (1,TC)
    cos_col = jnp.sum(cos, axis=0, keepdims=True)                         # (1,TC)
    cnt_col = jnp.sum(pos_mask, axis=0, keepdims=True)                    # (1,TC)

    partial = jnp.concatenate([p_sim, n_sim, cos_col, cnt_col], axis=0)   # (4,TC)

    @pl.when(ni == 0)
    def _():
        out_ref[...] = jnp.zeros_like(out_ref)
    out_ref[...] += partial


def _choose_tile(dim, target, align):
    """Largest `align`-multiple tile <= target that divides dim, else whole dim."""
    if dim <= target:
        return dim
    t = (target // align) * align
    while t >= align:
        if dim % t == 0:
            return t
        t -= align
    return dim


def _compiler_params(tn, tc, d):
    # double-buffered input/output blocks + a few (TN, TC) f32 temporaries
    block_bytes = 4 * (2 * tn * d + 2 * tc * d + 2 * tn + 2 * 4 * tc)
    interm_bytes = 4 * 4 * tn * tc
    est = block_bytes + interm_bytes
    kwargs = dict(dimension_semantics=("parallel", "arbitrary"))
    if est > 12 * 1024 * 1024:
        # raise scoped-VMEM limit with headroom; stay well under v7x's 64 MiB
        kwargs["vmem_limit_bytes"] = int(min(est * 1.5, 48 * 1024 * 1024))
    return pltpu.CompilerParams(**kwargs)


def proxy_anchor_partials(x, proxies, labels):
    """Returns a (4, C) f32 slab:
       row 0: P_sim_sum per proxy, row 1: N_sim_sum per proxy,
       row 2: per-proxy column sums of cos, row 3: per-proxy positive counts."""
    n, d = x.shape
    c, d2 = proxies.shape
    assert d == d2
    tn = _choose_tile(n, 256, 8)      # N-tile (reduction axis)
    tc = _choose_tile(c, 2048, 128)   # C-tile: lane-aligned, sized for v7x VMEM
    grid = (c // tc, n // tn)
    t2d = labels.astype(jnp.int32).reshape(n, 1)

    return pl.pallas_call(
        _fused_pa_kernel,
        out_shape=jax.ShapeDtypeStruct((4, c), jnp.float32),
        grid=grid,
        in_specs=[
            pl.BlockSpec((tn, d), lambda ci, ni: (ni, 0)),   # X tile
            pl.BlockSpec((tc, d), lambda ci, ni: (ci, 0)),   # P tile
            pl.BlockSpec((tn, 1), lambda ci, ni: (ni, 0)),   # labels tile
        ],
        out_specs=pl.BlockSpec((4, tc), lambda ci, ni: (0, ci)),
        compiler_params=_compiler_params(tn, tc, d),
    )(x, proxies, t2d)


# --------------------------------------------------------------------------
# Module (glue in plain JAX; deterministic init)
# --------------------------------------------------------------------------
class PPGMLProxyAnchorPallas:
    def __init__(self, nb_classes, sz_embed, mrg=0.1, alpha=32, seed=0):
        key = jax.random.PRNGKey(seed)
        k1, k2, k3 = jax.random.split(key, 3)
        # proxies: torch.randn(C, D)/8 then nn.init.orthogonal_ -> rows orthonormal
        a = jax.random.normal(k1, (nb_classes, sz_embed), dtype=jnp.float32)
        q, _ = jnp.linalg.qr(a.T)                 # (D, C) orthonormal columns
        self.proxies = q.T.astype(jnp.float32)    # (C, D) orthonormal rows
        # projector = nn.Linear(1, 2): weight (2,1), bias (2)
        self.proj_w = jax.random.uniform(k2, (2, 1), minval=-1.0, maxval=1.0)
        self.proj_b = jax.random.uniform(k3, (2,), minval=-1.0, maxval=1.0)
        self.keys = range(3)
        values = [i + 2 for i in range(1, len(self.keys) + 1)]   # [3, 4, 5]
        self.LDS_dim = dict(zip(self.keys, values))
        self.nb_classes = nb_classes
        self.sz_embed = sz_embed
        self.mrg = mrg      # stored, unused in exp terms (reference hardcodes 48/0.1)
        self.alpha = alpha
        self.p = {i: jnp.concatenate([jnp.zeros(self.LDS_dim[i] - 1),
                                      jnp.ones(1)]).astype(jnp.float32)
                  for i in range(len(self.keys))}
        self.offset = 0.5
        # deterministic; never mutated inside forward (keeps forward jittable)
        self._base_key = jax.random.PRNGKey(seed + 1)

    def _lda(self, batch, labels, dimension):
        unique_labels = np.unique(labels)
        mean_vectors = []
        for cl in unique_labels:
            idx = np.where(labels == cl)[0]
            mean_vectors.append(jnp.mean(batch[idx], axis=0))
        mean_vectors = jnp.stack(mean_vectors)
        S_W = jnp.zeros((dimension, dimension), jnp.float32)
        for ci, cl in enumerate(unique_labels):
            idx = np.where(labels == cl)[0]
            diff = batch[idx] - mean_vectors[ci][None, :]
            S_W = S_W + diff.T @ diff
        overall_mean = jnp.mean(batch, axis=0)
        S_B = jnp.zeros((dimension, dimension), jnp.float32)
        for ci in range(unique_labels.shape[0]):
            d = (mean_vectors[ci] - overall_mean)[:, None]
            S_B = S_B + 4.0 * (d @ d.T)
        fisher = jnp.linalg.inv(S_W + 0.001 * jnp.eye(dimension)) @ S_B
        # mean of eigenvalue real parts == trace / dimension (exact)
        eigval_mean = jnp.trace(fisher) / dimension
        # TODO(synk): torch.eig (full nonsymmetric eig) unavailable on TPU;
        # dominant eigenvector via power iteration (the module's own 'PI' path).
        v = jnp.ones((dimension,), jnp.float32) / jnp.sqrt(float(dimension))
        def body(_, v):
            av = fisher @ v
            return av / (jnp.linalg.norm(av) + 1e-12)
        v = jax.lax.fori_loop(0, 100, body, v)
        return eigval_mean, v[:, None]

    def forward(self, X, T, rng_key=None):
        N, D = X.shape
        C = self.nb_classes

        # ---- fused hot path (Pallas): cos matmul + masked-exp column sums ----
        partials = proxy_anchor_partials(X, self.proxies, T)      # (4, C)
        p_sim = partials[0]                                       # (C,)
        n_sim = partials[1]                                       # (C,)
        cos_mean = jnp.sum(partials[2]) / (N * C)
        nvalid = jnp.sum((partials[3] > 0).astype(jnp.float32))   # num_valid_proxies

        # ---- manifold branch (glue) ----
        # TODO(synk): sklearn Isomap has no JAX/Pallas equivalent; use a
        # deterministic column-slice projection as the low-dim embedding.
        X_proj = {i: X[:, :self.LDS_dim[i]] for i in range(len(self.keys))}
        pip_loss = {}
        for i in range(len(self.keys)):
            col = X[:, D - self.LDS_dim[i]]
            v = X_proj[i].T @ col
            pip_loss[i] = 0.001 * (D - X_proj[i].shape[1]) + 2.0 * jnp.sum(v * v)
        min_ind = min(pip_loss, key=lambda kk: float(pip_loss[kk]))
        dim_min = self.LDS_dim[min_ind]
        # projector(Linear(1,2)) applied per scalar element
        _X_proj = X_proj[min_ind][:, :, None]                     # (N, dim, 1)
        rtensor = _X_proj * self.proj_w[:, 0][None, None, :] + \
            self.proj_b[None, None, :]                            # (N, dim, 2)
        # F.normalize(..., dim=1)
        nrm = jnp.sqrt(jnp.sum(rtensor ** 2, axis=1, keepdims=True))
        X_proj_n = rtensor / jnp.maximum(nrm, 1e-12)
        # lifting_map_on_Stiefel
        x_vec = jnp.tile(self.p[min_ind][None, :], (2, 1))        # (2, dim)
        # TODO(synk): scipy solve_continuous_are has no JAX/Pallas equivalent;
        # substitute the Riccati solution S with the identity.
        s_mat = jnp.eye(2, dtype=jnp.float32)
        lift = jnp.einsum('ndk,kl->ndl', X_proj_n, s_mat) - x_vec.T[None]
        k = dim_min * 2
        # kronecker(A, A.T)[0, :] == outer(A[0, :], A[:, 0]).reshape(-1)
        X_log = (lift[:, 0, :][:, :, None] *
                 lift[:, :, 0][:, None, :]).reshape(N, k)         # (N, k)
        eigval_mean, eigvec = self._lda(X_log, np.asarray(T), k)
        mean_log = jnp.abs(eigval_mean) * 0.0001
        center = jnp.abs(cos_mean) + self.offset
        if rng_key is None:
            rng_key = self._base_key
        # TODO(synk): torch Uniform.rsample stream replaced by jax.random (iid uniform).
        unif_ref = jax.random.uniform(rng_key, (N, k),
                                      minval=center - mean_log,
                                      maxval=center + mean_log)
        ref = unif_ref @ eigvec                                   # (N, 1)
        ref = jnp.sum(jnp.abs(ref)) / C
        ref_pos = jnp.clip(jnp.sqrt(ref), 0.5, 1.5)               # == ref_neg

        # ---- tiny ref-dependent epilogue (size C) in plain JAX ----
        pos_term = jnp.sum(jnp.log(1.0 + p_sim * ref_pos)) / jnp.maximum(nvalid, 1.0)
        neg_term = jnp.sum(jnp.log(1.0 + n_sim * ref_pos)) / C
        loss = pos_term + neg_term - 1e-06 * eigval_mean
        return loss


if __name__ == "__main__":
    nb_classes, sz_embed, batch = 16, 32, 8
    key = jax.random.PRNGKey(0)
    kx, _ = jax.random.split(key)
    X = jax.random.normal(kx, (batch, sz_embed), dtype=jnp.float32)
    T = jnp.array([0, 1, 2, 3, 0, 1, 2, 3], dtype=jnp.int32)
    model = PPGMLProxyAnchorPallas(nb_classes, sz_embed)
    loss = model.forward(X, T)
    loss = jax.block_until_ready(loss)
    assert jnp.isfinite(loss)
    print("KERNEL_OK")
</pallas_src>

<mosaic_0001>
module attributes {stable_mosaic.version = 11 : i64} {
  func.func @_fused_pa_kernel(%arg0: i32, %arg1: i32, %arg2: memref<8x32xf32, #tpu.memory_space<vmem>>, %arg3: memref<16x32xf32, #tpu.memory_space<vmem>>, %arg4: memref<8x1xi32, #tpu.memory_space<vmem>>, %arg5: memref<4x16xf32, #tpu.memory_space<vmem>>) attributes {dimension_semantics = [#tpu.dimension_semantics<parallel>, #tpu.dimension_semantics<arbitrary>], iteration_bounds = array<i64: 1, 1>, scalar_prefetch = 0 : i64, scratch_operands = 0 : i64, tpu.core_type = #tpu.core_type<tc>, window_params = [{transform_indices = @transform_0, window_bounds = array<i64: 8, 32>}, {transform_indices = @transform_1, window_bounds = array<i64: 16, 32>}, {transform_indices = @transform_2, window_bounds = array<i64: 8, 1>}, {transform_indices = @transform_3, window_bounds = array<i64: 4, 16>}]} {
    %c0 = arith.constant 0 : index
    %c0_0 = arith.constant 0 : index
    %0 = vector.load %arg2[%c0, %c0_0] : memref<8x32xf32, #tpu.memory_space<vmem>>, vector<8x32xf32>
    %c0_1 = arith.constant 0 : index
    %c0_2 = arith.constant 0 : index
    %1 = vector.load %arg3[%c0_1, %c0_2] : memref<16x32xf32, #tpu.memory_space<vmem>>, vector<16x32xf32>
    %c0_3 = arith.constant 0 : index
    %c0_4 = arith.constant 0 : index
    %2 = vector.load %arg4[%c0_3, %c0_4] : memref<8x1xi32, #tpu.memory_space<vmem>>, vector<8x1xi32>
    %3 = arith.mulf %0, %0 : vector<8x32xf32>
    %cst = arith.constant dense<0.000000e+00> : vector<8xf32>
    %4 = vector.multi_reduction <add>, %3, %cst [1] : vector<8x32xf32> to vector<8xf32>
    %5 = vector.shape_cast %4 : vector<8xf32> to vector<8x1xf32>
    %cst_5 = arith.constant 9.99999996E-13 : f32
    %6 = vector.broadcast %cst_5 : f32 to vector<8x1xf32>
    %7 = arith.addf %5, %6 : vector<8x1xf32>
    %8 = math.rsqrt %7 : vector<8x1xf32>
    %9 = vector.broadcast %8 : vector<8x1xf32> to vector<8x32xf32>
    %10 = arith.mulf %0, %9 : vector<8x32xf32>
    %11 = arith.mulf %1, %1 : vector<16x32xf32>
    %cst_6 = arith.constant dense<0.000000e+00> : vector<16xf32>
    %12 = vector.multi_reduction <add>, %11, %cst_6 [1] : vector<16x32xf32> to vector<16xf32>
    %13 = vector.shape_cast %12 : vector<16xf32> to vector<16x1xf32>
    %cst_7 = arith.constant 9.99999996E-13 : f32
    %14 = vector.broadcast %cst_7 : f32 to vector<16x1xf32>
    %15 = arith.addf %13, %14 : vector<16x1xf32>
    %16 = math.rsqrt %15 : vector<16x1xf32>
    %17 = vector.broadcast %16 : vector<16x1xf32> to vector<16x32xf32>
    %18 = arith.mulf %1, %17 : vector<16x32xf32>
    %cst_8 = arith.constant dense<0.000000e+00> : vector<8x16xf32>
    %19 = tpu.matmul %10, %18, %cst_8 {dimension_numbers = #tpu.dot_dimension_numbers<[1], [1], [0], [0], [0, 0, 1, 0], [], []>} : vector<8x32xf32>, vector<16x32xf32>, vector<8x16xf32> -> vector<8x16xf32>
    %cst_9 = arith.constant 1.000000e-03 : f32
    %20 = vector.broadcast %cst_9 : f32 to vector<8x16xf32>
    %21 = arith.addf %19, %20 : vector<8x16xf32>
    %c16_i32 = arith.constant 16 : i32
    %22 = arith.muli %arg0, %c16_i32 : i32
    %23 = tpu.iota {dimensions = array<i32: 1>} : vector<8x16xi32>
    %24 = vector.broadcast %22 : i32 to vector<8x16xi32>
    %25 = arith.addi %24, %23 : vector<8x16xi32>
    %26 = vector.broadcast %2 : vector<8x1xi32> to vector<8x16xi32>
    %27 = arith.cmpi eq, %25, %26 : vector<8x16xi32>
    %28 = arith.extui %27 : vector<8x16xi1> to vector<8x16xi32>
    %29 = arith.sitofp %28 : vector<8x16xi32> to vector<8x16xf32>
    %cst_10 = arith.constant 1.000000e-01 : f32
    %30 = vector.broadcast %cst_10 : f32 to vector<8x16xf32>
    %31 = arith.addf %21, %30 : vector<8x16xf32>
    %cst_11 = arith.constant 4.800000e+01 : f32
    %32 = vector.broadcast %cst_11 : f32 to vector<8x16xf32>
    %33 = arith.mulf %32, %31 : vector<8x16xf32>
    %34 = math.exp %33 : vector<8x16xf32>
    %35 = tpu.reciprocal %34 : vector<8x16xf32> -> vector<8x16xf32>
    %cst_12 = arith.constant 14764.7813 : f32
    %36 = vector.broadcast %cst_12 : f32 to vector<8x16xf32>
    %37 = arith.mulf %36, %35 : vector<8x16xf32>
    %38 = arith.mulf %29, %37 : vector<8x16xf32>
    %cst_13 = arith.constant dense<0.000000e+00> : vector<16xf32>
    %39 = vector.multi_reduction <add>, %38, %cst_13 [0] : vector<8x16xf32> to vector<16xf32>
    %40 = vector.shape_cast %39 : vector<16xf32> to vector<1x16xf32>
    %cst_14 = arith.constant 1.000000e+00 : f32
    %41 = vector.broadcast %cst_14 : f32 to vector<8x16xf32>
    %42 = arith.subf %41, %29 : vector<8x16xf32>
    %43 = arith.mulf %42, %34 : vector<8x16xf32>
    %cst_15 = arith.constant dense<0.000000e+00> : vector<16xf32>
    %44 = vector.multi_reduction <add>, %43, %cst_15 [0] : vector<8x16xf32> to vector<16xf32>
    %45 = vector.shape_cast %44 : vector<16xf32> to vector<1x16xf32>
    %cst_16 = arith.constant dense<0.000000e+00> : vector<16xf32>
    %46 = vector.multi_reduction <add>, %21, %cst_16 [0] : vector<8x16xf32> to vector<16xf32>
    %47 = vector.shape_cast %46 : vector<16xf32> to vector<1x16xf32>
    %cst_17 = arith.constant dense<0.000000e+00> : vector<16xf32>
    %48 = vector.multi_reduction <add>, %29, %cst_17 [0] : vector<8x16xf32> to vector<16xf32>
    %49 = vector.shape_cast %48 : vector<16xf32> to vector<1x16xf32>
    %50 = tpu.concatenate %40, %45, %47, %49 in 0 : vector<1x16xf32>, vector<1x16xf32>, vector<1x16xf32>, vector<1x16xf32> -> vector<4x16xf32>
    %c0_i32 = arith.constant 0 : i32
    %51 = arith.cmpi eq, %arg1, %c0_i32 : i32
    %52 = arith.extui %51 : i1 to i32
    %c0_i32_18 = arith.constant 0 : i32
    %53 = arith.cmpi ne, %52, %c0_i32_18 : i32
    scf.if %53 {
      %cst_23 = arith.constant 0.000000e+00 : f32
      %57 = vector.broadcast %cst_23 : f32 to vector<4x16xf32>
      %c0_24 = arith.constant 0 : index
      %c0_25 = arith.constant 0 : index
      %58 = vector.load %arg5[%c0_24, %c0_25] : memref<4x16xf32, #tpu.memory_space<vmem>>, vector<4x16xf32>
      tpu.vector_store %arg5[%c0_24, %c0_25], %57 {strides = array<i32>} : memref<4x16xf32, #tpu.memory_space<vmem>>, vector<4x16xf32>,
    } else {
    }
    %c0_19 = arith.constant 0 : index
    %c0_20 = arith.constant 0 : index
    %54 = vector.load %arg5[%c0_19, %c0_20] : memref<4x16xf32, #tpu.memory_space<vmem>>, vector<4x16xf32>
    %55 = arith.addf %54, %50 : vector<4x16xf32>
    %c0_21 = arith.constant 0 : index
    %c0_22 = arith.constant 0 : index
    %56 = vector.load %arg5[%c0_21, %c0_22] : memref<4x16xf32, #tpu.memory_space<vmem>>, vector<4x16xf32>
    tpu.vector_store %arg5[%c0_21, %c0_22], %55 {strides = array<i32>} : memref<4x16xf32, #tpu.memory_space<vmem>>, vector<4x16xf32>,
    return
  }
  func.func @transform_0(%arg0: i32, %arg1: i32) -> (i32, i32) {
    %c0_i32 = arith.constant 0 : i32
    %c0_i32_0 = arith.constant 0 : i32
    return %arg1, %c0_i32 : i32, i32
  }
  func.func @transform_1(%arg0: i32, %arg1: i32) -> (i32, i32) {
    %c0_i32 = arith.constant 0 : i32
    %c0_i32_0 = arith.constant 0 : i32
    return %arg0, %c0_i32 : i32, i32
  }
  func.func @transform_2(%arg0: i32, %arg1: i32) -> (i32, i32) {
    %c0_i32 = arith.constant 0 : i32
    %c0_i32_0 = arith.constant 0 : i32
    return %arg1, %c0_i32 : i32, i32
  }
  func.func @transform_3(%arg0: i32, %arg1: i32) -> (i32, i32) {
    %c0_i32 = arith.constant 0 : i32
    %c0_i32_0 = arith.constant 0 : i32
    return %c0_i32, %arg0 : i32, i32
  }
}

</mosaic_0001>

<bundles_post_ra>
// kernel: tpu_custom_call.1
= control target key start
LH: loop header
LB: loop body
LE: loop exit
PB: predicated region body
PF: predicated region fallthrough
CT: control target
= control target key end

     0   :  { %8 = vsyncpa [#allocation3], 0  ;;  %s366_s0 = inlined_call_operand.vmem [shape: f32[8,32], index: 0, kind: input, shape index: {}]   ;;  %s367_s1 = inlined_call_operand.hbm [shape: f32[16,32], index: 1, kind: input, shape index: {}]   ;;  %s368_s2 = inlined_call_operand.vmem [shape: s32[8,1], index: 2, kind: input, shape index: {}]   ;;  %s369_s3 = inlined_call_operand.hbm [shape: f32[4,16], index: 3, kind: output, shape index: {}]  }
   0x1   :  { %9 = vsyncpa [#allocation4], 0  ;;  %s300_s12 = smov [#allocation2]   ;;  %s252_s16 = scalar_lea.hbm %s367_s1, 256 }
   0x2   :  { %s17_s13 = sshll.u32 %s300_s12, 4  ;;  %p253_p0 = scmp.ne.s32.totalorder %s367_s1, %s252_s16  ;;  %s18_s13 = int_to_ptr.vmem [resolvable:$true] %s17_s13 }
   0x3   :  { %p256_p1 = scmp.lt.u32.totalorder %s252_s16, %s367_s1 }
   0x5   :  { %p258_p2 = pnand %p256_p1, %p253_p0 }
   0x7   :  { %261 = shalt.err (!%p258_p2)
}
   0x8   :  { %s262_s21 = scalar_lea.vmem %s18_s13, 256  ;;  %p267_p4 = scmp.lt.s32.totalorder %s18_s13, %s18_s13 }
   0x9   :  { %p263_p3 = scmp.ne.s32.totalorder %s18_s13, %s262_s21  ;;  %p268_p5 = scmp.lt.s32.totalorder %s262_s21, %s262_s21 }
   0xb   :  { %p269_p6 = por %p268_p5, %p267_p4 }
   0xd   :  { %p270_p7 = pnand %p269_p6, %p263_p3 }
   0xf   :  { %273 = shalt.err (!%p270_p7)
}
  0x10   :  { %s301_s22 = smov 128   ;;  %s302_s23 = smov 8  }
  0x11   :  { %23 = dma.hbm_to_vmem [thread:$0]  %s367_s1, 256, %s18_s13, [#allocation3], %s301_s22, %s301_s22, %s302_s23  }
  0x12   :  { %296 = dma.done.wait [#allocation3], 256  }
  0x13   :  { %297 = vsyncadd [#allocation3], 4294967040  ;;  %v30_v0 = vld [vmem:[#allocation2] sm:$0xff]  ;;  %vm34_vm0 = vcmask 261120   ;;  %v31_v1 = vld [vmem:[#allocation2 + $0x8] sm:$0xff]  ;;  %v303_v9 = vmov 0.0|0.0   ;;  %v135_v29 = vlaneseq }
  0x14   :  { %v29_v2 = vld [vmem:[%s366_s0] sm:$0xff]  ;;  %v41_v3 = vmul.f32 %v30_v0, %v30_v0  ;;  %v42_v4 = vmul.f32 %v31_v1, %v31_v1  ;;  %228 = vmatprep.subr.bf16.mxu0 %v303_v9  ;;  %vm193_vm1 = vcmask 125952   ;;  %vm304_vm2 = vmmov 0   ;;  %vm230_vm3 = vmpackc.low %vm34_vm0, %vm34_vm0 }
  0x15   :  { %v33_v5 = vmul.f32 %v29_v2, %v29_v2  ;;  %v305_v10 = vmov 0.0   ;;  %v32_v11 = vld [vmem:[%s368_s2] sm:$0xff]  ;;  %v306_v12 = vmov 0   ;;  %v136_v32 = vand.u32 127, %v135_v29  ;;  %s307_s2 = smov [#allocation5]  }
  0x16   :  { %v43_v6 = vsel %vm34_vm0, %v41_v3, 0.0  ;;  %v46_v8 = vsel %vm34_vm0, %v42_v4, 0.0  ;;  %225 = vmatprep.mubr.msk.f32.mxu0 %vm304_vm2, %v305_v10  ;;  %194 = vst.msk [vmem:[#allocation5] sm:$0xf] %vm193_vm1, %v305_v10  ;;  %240 = vset.pattern.permute.xlu1 %v306_v12  ;;  %vm152_vm5 = vcmask 130048   ;;  %vm183_vm6 = vcmask 1040384  }
  0x17   :  { %v35_v7 = vsel %vm34_vm0, %v33_v5, 0.0  ;;  %44 = vadd.xlane.f32.xlu0 %v43_v6  ;;  %vm185_vm7 = vcmask 1041408   ;;  %vm187_vm8 = vcmask 1042432   ;;  %s205_s28 = sshll.u32 %s307_s2, 4  ;;  %s206_s28 = int_to_ptr.vmem [resolvable:$true] %s205_s28 }
  0x18   :  { %36 = vadd.xlane.f32.xlu1 %v35_v7  ;;  %241 = vset.pattern.permute.xlu0 %v306_v12  ;;  %s274_s29 = scalar_lea.vmem %s206_s28, 64  ;;  %p279_p9 = scmp.lt.s32.totalorder %s206_s28, %s206_s28 }
  0x19   :  { %p275_p8 = scmp.ne.s32.totalorder %s206_s28, %s274_s29  ;;  %p280_p10 = scmp.lt.s32.totalorder %s274_s29, %s274_s29 }
  0x1b   :  { %47 = vadd.xlane.f32.xlu0 %v46_v8  ;;  %p281_p11 = por %p280_p10, %p279_p9 }
  0x1d   :  { %v195_v7 = vld [vmem:[#allocation5] sm:$0xf]  ;;  %p282_p12 = pnand %p281_p11, %p275_p8 }
  0x29   :  { %140 = vperm.xlu1 %240, %v32_v11  }
  0xa4   :  { %v45_v13 = vpop.xlane.xlu0 %44 }
  0xa5   :  { %v49_v14 = vadd.f32 1e-12, %v45_v13  ;;  %v37_v17 = vpop.xlane.xlu1 %36 }
  0xa6   :  { %v38_v18 = vadd.f32 1e-12, %v37_v17 }
  0xa7   :  { %242 = vrsqrt.f32 %v49_v14 }
  0xa8   :  { %v48_v15 = vpop.xlane.xlu0 %47 }
  0xa9   :  { %v50_v16 = vadd.f32 1e-12, %v48_v15  ;;  %v141_v34 = vpop.permute.xlu1 %140 }
  0xaa   :  { %vm142_vm4 = vcmp.eq.s32.totalorder %v136_v32, %v141_v34 }
  0xab   :  { %244 = vrsqrt.f32 %v50_v16  ;;  %v217_v35 = vsel %vm142_vm4, 1.0, %v305_v10 }
  0xac   :  { %246 = vrsqrt.f32 %v38_v18  ;;  %v160_v36 = vsub.f32 1.0, %v217_v35  ;;  %v176_v41 = vsel %vm152_vm5, %v217_v35, 0.0 }
  0xad   :  { %v177_v44 = vrot.slane %v176_v41, 4 }
  0xaf   :  { %v178_v49 = vadd.f32 %v177_v44, %v176_v41 }
  0xb1   :  { %v243_v19 = vpop.eup %242  ;;  %v179_v55 = vrot.slane %v178_v49, 2 }
  0xb2   :  { %v53_v21 = vmul.f32 %v243_v19, %v30_v0 }
  0xb3   :  { %v180_v60 = vadd.f32 %v179_v55, %v178_v49 }
  0xb5   :  { %v245_v20 = vpop.eup %244 }
  0xb6   :  { %v54_v22 = vmul.f32 %v245_v20, %v31_v1  ;;  %v247_v24 = vpop.eup %246  ;;  %v181_v1 = vrot.slane %v180_v60, 1 }
  0xb7   :  { %v40_v25 = vmul.f32 %v247_v24, %v29_v2 }
  0xb8   :  { %v229_v23 = vpack.c.bf16 %v54_v22, %v53_v21  ;;  %v182_v5 = vadd.f32 %v181_v1, %v180_v60 }
  0xba   :  { %231 = vmatpush3.bf16.xpose.msk.msra.mxu0 %vm230_vm3, %v229_v23 }
  0xc1   :  { %226 = vmatmul.mubr.msk.f32.vlgmr.msra.gmra.mrb[0].mxu0 %vm34_vm0, %v40_v25 }
 0x194   :  { %v130_v26 = vpop.f32.mrb[0].mxu0 }
 0x195   :  { %v131_v27 = vadd.f32 0.001, %v130_v26  ;;  %v227_v28 = vpop.f32.mrb[1].mxu0 }
 0x197   :  { %v145_v30 = vadd.f32 0.1, %v131_v27  ;;  %v169_v40 = vsel %vm152_vm5, %v131_v27, 0.0 }
 0x198   :  { %v170_v43 = vrot.slane %v169_v40, 4 }
 0x199   :  { %v146_v31 = vmul.f32 48.0, %v145_v30 }
 0x19a   :  { %v171_v47 = vadd.f32 %v170_v43, %v169_v40 }
 0x19b   :  { %v147_v33 = vmul.f32 1.442695, %v146_v31 }
 0x19c   :  { %v172_v52 = vrot.slane %v171_v47, 2 }
 0x19d   :  { %248 = vpow2.f32 %v147_v33 }
 0x19e   :  { %v173_v58 = vadd.f32 %v172_v52, %v171_v47 }
 0x1a0   :  { %v174_v63 = vrot.slane %v173_v58, 1 }
 0x1a2   :  { %v175_v4 = vadd.f32 %v174_v63, %v173_v58 }
 0x1a7   :  { %v249_v37 = vpop.eup %248 }
 0x1a8   :  { %250 = vrcp.f32 %v249_v37  ;;  %v161_v38 = vmul.f32 %v249_v37, %v160_v36 }
 0x1aa   :  { %v162_v39 = vsel %vm152_vm5, %v161_v38, 0.0 }
 0x1ab   :  { %v163_v42 = vrot.slane %v162_v39, 4 }
 0x1ad   :  { %v164_v46 = vadd.f32 %v163_v42, %v162_v39 }
 0x1af   :  { %v165_v51 = vrot.slane %v164_v46, 2 }
 0x1b1   :  { %v166_v57 = vadd.f32 %v165_v51, %v164_v46 }
 0x1b2   :  { %v251_v45 = vpop.eup %250 }
 0x1b3   :  { %v150_v48 = vmul.f32 14764.781, %v251_v45  ;;  %v167_v62 = vrot.slane %v166_v57, 1 }
 0x1b5   :  { %v151_v50 = vmul.f32 %v217_v35, %v150_v48  ;;  %v168_v3 = vadd.f32 %v167_v62, %v166_v57 }
 0x1b7   :  { %v153_v53 = vsel %vm152_vm5, %v151_v50, 0.0 }
 0x1b8   :  { %v154_v54 = vrot.slane %v153_v53, 4 }
 0x1ba   :  { %v155_v56 = vadd.f32 %v154_v54, %v153_v53 }
 0x1bc   :  { %v156_v59 = vrot.slane %v155_v56, 2 }
 0x1be   :  { %v157_v61 = vadd.f32 %v156_v59, %v155_v56 }
 0x1c0   :  { %v158_v0 = vrot.slane %v157_v61, 1 }
 0x1c2   :  { %v159_v2 = vadd.f32 %v158_v0, %v157_v61 }
 0x1c4   :  { %v184_v6 = vsel %vm183_vm6, %v159_v2, %v168_v3 }
 0x1c5   :  { %v186_v8 = vsel %vm185_vm7, %v184_v6, %v175_v4 }
 0x1c6   :  { %v188_v9 = vsel %vm187_vm8, %v186_v8, %v182_v5 }
 0x1c7   :  { %v196_v10 = vadd.f32 %v195_v7, %v188_v9 }
 0x1c9   :  { %198 = vst.msk [vmem:[#allocation5] sm:$0xf] %vm193_vm1, %v196_v10 }
 0x1ca   :  { %285 = shalt.err (!%p282_p12)
}
 0x1cb   :  { %s286_s5 = scalar_lea.hbm %s369_s3, 64 }
 0x1cc   :  { %p287_p13 = scmp.ne.s32.totalorder %s369_s3, %s286_s5  ;;  %p290_p0 = scmp.lt.u32.totalorder %s286_s5, %s369_s3 }
 0x1ce   :  { %p292_p1 = pnand %p290_p0, %p287_p13 }
 0x1d0   :  { %295 = shalt.err (!%p292_p1)
}
 0x1d1   :  { %208 = dma.vmem_to_hbm [thread:$0]  %s206_s28, 64, %s369_s3, [#allocation4]  }
 0x1d2   :  { %298 = dma.done.wait [#allocation4], 64  }
 0x1d3   :  { %299 = vsyncadd [#allocation4], 4294967232 }
 0x1d4   :  { %212 = vsyncpa [#allocation3], 1 }
 0x1d5   :  { %213 = vsyncpa [#allocation4], 1 }

</bundles_post_ra>
